<compile_context>
chip_gen: v7x
topology: tpu7x:2x2x1
jax: 0.10.0
libtpu: 0.0.40
codegen_flags: <defaults>
</compile_context>

<pallas_src>
import jax
import jax.numpy as jnp
from jax.experimental import pallas as pl
from jax.experimental.pallas import tpu as pltpu

EPS = 1e-5


# ----------------------------- Pallas kernel -------------------------------- #

def _phi(x3, w2_ref, w1_ref, d_ref):
    """One Phi layer: relu(bn2(conv2(x)) - bn1(conv1(max_set(x)))), eval-mode BN folded.

    x3: (bb, n, ci) f32 activations. Returns (bb, n, co) f32.
    w2/w1: (ci, co) matmul-dtype (f32 or bf16). d = c2 - c1: (1, co) f32.
    """
    bb, n, ci = x3.shape
    co = w2_ref.shape[1]
    wdt = w2_ref.dtype
    xm = jnp.max(x3, axis=1)                                   # (bb, ci)  one sublane reduce
    # Tile-aligned reshape (n multiple of 8) -> plain 2-D MXU dots, f32 accumulate.
    h2 = jnp.dot(x3.reshape(bb * n, ci).astype(wdt), w2_ref[...],
                 preferred_element_type=jnp.float32)           # (bb*n, co)
    h1 = jnp.dot(xm.astype(wdt), w1_ref[...],
                 preferred_element_type=jnp.float32)           # (bb, co)
    hm = h1 - d_ref[...]                                       # combined bias d = c2 - c1
    return jnp.maximum(h2.reshape(bb, n, co) - hm[:, None, :], 0.0)


def deepset_kernel(x_ref,
                   w2a_ref, w1a_ref, da_ref,
                   w2b_ref, w1b_ref, db_ref,
                   w2c_ref, w1c_ref, dc_ref,
                   r1_ref, rb1_ref, r2_ref, rb2_ref,
                   out_ref):
    # x_ref: (bb, N, C_in) channels-last block (matmul dtype).
    x3 = x_ref[...].astype(jnp.float32)                        # VPU math stays f32 (v5e-safe)

    x3 = _phi(x3, w2a_ref, w1a_ref, da_ref)                    # (bb, n, 32)
    x3 = _phi(x3, w2b_ref, w1b_ref, db_ref)                    # (bb, n, 64)
    x3 = _phi(x3, w2c_ref, w1c_ref, dc_ref)                    # (bb, n, E)

    pooled = jnp.max(x3, axis=1)                               # (bb, E) == adaptive_max_pool1d

    # Rho: Linear(E,32)+BN (folded) -> ReLU -> Linear(32, out_pad).
    z = jnp.maximum(
        jnp.dot(pooled.astype(r1_ref.dtype), r1_ref[...],
                preferred_element_type=jnp.float32) + rb1_ref[...], 0.0)     # (bb, 32)
    y = jnp.dot(z.astype(r2_ref.dtype), r2_ref[...],
                preferred_element_type=jnp.float32) + rb2_ref[...]           # (bb, out_pad)
    out_ref[...] = y.astype(out_ref.dtype)                     # lane-dense (bb, 128k) store


def _pick_batch_block(B, N, target_rows=1024):
    """~512-2048 set-element rows per grid step; must divide B and keep the output
    block's sublane dim legal (multiple of 8, or the full batch). Per-step working
    set stays well under v7x's 64 MiB VMEM at these channel widths."""
    cap = max(1, min(B, max(1, target_rows // max(N, 1))))
    for bb in range(cap, 0, -1):
        if B % bb == 0 and (bb % 8 == 0 or bb == B):
            return bb
    return B


def deepset_forward(x_ncl, ops, out_channels, batch_block=None):
    """x_ncl: (B, C_in, N) float32 (PyTorch Conv1d layout). Returns (B, out_channels) f32.

    `ops` comes from pack_params(); its weight-matrix dtype (f32 or bf16) sets the MXU
    operand dtype. Accumulation and all VPU intermediates stay f32.
    """
    B, C, N = x_ncl.shape
    out_pad = ops[-1].shape[1]                                 # 128-lane-padded out channels
    matmul_dtype = ops[0].dtype
    bb = _pick_batch_block(B, N) if batch_block is None else batch_block
    assert B % bb == 0, "batch_block must divide B"

    # Channels-last once in the wrapper (one cheap XLA pass over the tiny input);
    # everything inside the kernel is then tile-aligned (no relayouts).
    x_nlc = jnp.transpose(x_ncl, (0, 2, 1)).astype(matmul_dtype)

    in_specs = [pl.BlockSpec((bb, N, C), lambda i: (i, 0, 0))] + \
               [pl.BlockSpec(o.shape, lambda i: (0, 0)) for o in ops]

    out = pl.pallas_call(
        deepset_kernel,
        out_shape=jax.ShapeDtypeStruct((B, out_pad), jnp.float32),
        grid=(B // bb,),
        in_specs=in_specs,
        out_specs=pl.BlockSpec((bb, out_pad), lambda i: (i, 0)),
        compiler_params=pltpu.CompilerParams(
            # independent batch blocks -> pipelined + sharded across TCs on v7x
            dimension_semantics=("parallel",)),
    )(x_nlc, *ops)
    return out[:, :out_channels]


# --------------------------- parameter construction ------------------------- #

def _bn_stats(key, c):
    kg, kb, km, kv = jax.random.split(key, 4)
    gamma = 1.0 + 0.1 * jax.random.normal(kg, (c,))
    beta = 0.1 * jax.random.normal(kb, (c,))
    mean = 0.1 * jax.random.normal(km, (c,))
    var = jax.random.uniform(kv, (c,), minval=0.5, maxval=1.5)
    return gamma, beta, mean, var


def init_folded_params(key, in_channels, out_channels, embedding):
    """Deterministic synthetic params; eval-mode BN folded into weight/bias."""
    dims = [(in_channels, 32), (32, 64), (64, embedding)]
    keys = iter(jax.random.split(key, 32))
    folded = []
    for cin, cout in dims:
        w1 = jax.random.normal(next(keys), (cout, cin)) / jnp.sqrt(cin)   # conv1 (O,C,1) squeezed
        w2 = jax.random.normal(next(keys), (cout, cin)) / jnp.sqrt(cin)   # conv2
        g1, b1, m1, v1 = _bn_stats(next(keys), cout)
        g2, b2, m2, v2 = _bn_stats(next(keys), cout)
        s1 = g1 / jnp.sqrt(v1 + EPS)
        s2 = g2 / jnp.sqrt(v2 + EPS)
        folded += [w1.T * s1[None, :], (b1 - m1 * s1)[None, :],
                   w2.T * s2[None, :], (b2 - m2 * s2)[None, :]]
    # Rho: Linear(E,32) -> BN(32) -> ReLU -> Linear(32,out)
    wl1 = jax.random.normal(next(keys), (32, embedding)) / jnp.sqrt(embedding)
    bl1 = 0.1 * jax.random.normal(next(keys), (32,))
    g, b, m, v = _bn_stats(next(keys), 32)
    wl2 = jax.random.normal(next(keys), (out_channels, 32)) / jnp.sqrt(32)
    bl2 = 0.1 * jax.random.normal(next(keys), (out_channels,))
    s = g / jnp.sqrt(v + EPS)
    folded += [wl1.T * s[None, :], ((bl1 - m) * s + b)[None, :],
               wl2.T, bl2[None, :]]
    return [f.astype(jnp.float32) for f in folded]


def pack_params(p, out_channels, matmul_dtype=jnp.float32):
    """Kernel operands: per Phi layer (w2, w1, d=c2-c1); Rho (r1, rb1, r2_pad, rb2_pad).

    Weight matrices take `matmul_dtype` (bf16 halves DMA/VMEM on v6e/v7x; f32 accumulate
    is kept inside the kernel). Biases stay f32 (VPU side). No in-kernel slicing needed.
    """
    (a1_1, c1_1, a2_1, c2_1,
     a1_2, c1_2, a2_2, c2_2,
     a1_3, c1_3, a2_3, c2_3,
     r1, rb1, r2, rb2) = p
    out_pad = ((out_channels + 127) // 128) * 128              # lane-dense padded output width
    r2p = jnp.pad(r2, ((0, 0), (0, out_pad - out_channels)))
    rb2p = jnp.pad(rb2, ((0, 0), (0, out_pad - out_channels)))
    wd = matmul_dtype
    f32 = jnp.float32
    return [a2_1.astype(wd), a1_1.astype(wd), (c2_1 - c1_1).astype(f32),
            a2_2.astype(wd), a1_2.astype(wd), (c2_2 - c1_2).astype(f32),
            a2_3.astype(wd), a1_3.astype(wd), (c2_3 - c1_3).astype(f32),
            r1.astype(wd), rb1.astype(f32),
            r2p.astype(wd), rb2p.astype(f32)]


# ------------------------------ pure-JAX reference --------------------------- #

def deepset_ref(x_ncl, p, matmul_dtype=jnp.float32):
    """f32 reference; with matmul_dtype=bf16 it applies the same MXU-operand quantization
    (f32 accumulation) as the kernel, so the comparison isolates dataflow correctness."""
    md = matmul_dtype

    def dot(a, b):
        return jnp.dot(a.astype(md), b.astype(md), preferred_element_type=jnp.float32)

    x = jnp.transpose(x_ncl, (0, 2, 1)).astype(md).astype(jnp.float32)   # (B, N, C)
    (a1_1, c1_1, a2_1, c2_1,
     a1_2, c1_2, a2_2, c2_2,
     a1_3, c1_3, a2_3, c2_3,
     r1, rb1, r2, rb2) = p

    def phi(x, a1, c1, a2, c2):
        xm = jnp.max(x, axis=1, keepdims=True)
        return jnp.maximum((dot(x, a2) + c2) - (dot(xm, a1) + c1), 0.0)

    x = phi(x, a1_1, c1_1, a2_1, c2_1)
    x = phi(x, a1_2, c1_2, a2_2, c2_2)
    x = phi(x, a1_3, c1_3, a2_3, c2_3)
    pooled = jnp.max(x, axis=1)                                 # (B, E)
    z = jnp.maximum(dot(pooled, r1) + rb1, 0.0)
    return dot(z, r2) + rb2


# ------------------------------------ main ----------------------------------- #

if __name__ == "__main__":
    B, C_IN, N = 2, 4, 16          # batch, in_channels, set size
    EMBEDDING, OUT = 64, 10

    key = jax.random.PRNGKey(0)
    kx, kp = jax.random.split(key)
    x = jax.random.normal(kx, (B, C_IN, N), dtype=jnp.float32)   # PyTorch NCL layout
    params = init_folded_params(kp, C_IN, OUT, EMBEDDING)

    # --- exact f32 path ---
    ops_f32 = pack_params(params, OUT, matmul_dtype=jnp.float32)
    y = jax.block_until_ready(deepset_forward(x, ops_f32, OUT))
    y_ref = deepset_ref(x, params)
    assert y.shape == (B, OUT), y.shape
    assert jnp.allclose(y, y_ref, atol=1e-4, rtol=1e-4), jnp.max(jnp.abs(y - y_ref))

    # --- bf16 MXU operands (f32 accumulate), vs identically-quantized reference ---
    ops_bf16 = pack_params(params, OUT, matmul_dtype=jnp.bfloat16)
    y16 = jax.block_until_ready(deepset_forward(x, ops_bf16, OUT))
    y16_ref = deepset_ref(x, params, matmul_dtype=jnp.bfloat16)
    assert jnp.allclose(y16, y16_ref, atol=2e-3, rtol=2e-3), jnp.max(jnp.abs(y16 - y16_ref))

    # --- larger batch: exercises the multi-step pipelined / megacore-sharded grid ---
    B2 = 256
    x2 = jax.random.normal(jax.random.PRNGKey(1), (B2, C_IN, N), dtype=jnp.float32)
    y2 = jax.block_until_ready(deepset_forward(x2, ops_f32, OUT))   # bb=64 -> grid=(4,)
    y2_ref = deepset_ref(x2, params)
    assert jnp.allclose(y2, y2_ref, atol=1e-4, rtol=1e-4), jnp.max(jnp.abs(y2 - y2_ref))

    print("KERNEL_OK")
</pallas_src>

<mosaic_0001>
module attributes {stable_mosaic.version = 11 : i64} {
  func.func @deepset_kernel(%arg0: i32, %arg1: memref<2x16x4xf32, #tpu.memory_space<vmem>>, %arg2: memref<4x32xf32, #tpu.memory_space<vmem>>, %arg3: memref<4x32xf32, #tpu.memory_space<vmem>>, %arg4: memref<1x32xf32, #tpu.memory_space<vmem>>, %arg5: memref<32x64xf32, #tpu.memory_space<vmem>>, %arg6: memref<32x64xf32, #tpu.memory_space<vmem>>, %arg7: memref<1x64xf32, #tpu.memory_space<vmem>>, %arg8: memref<64x64xf32, #tpu.memory_space<vmem>>, %arg9: memref<64x64xf32, #tpu.memory_space<vmem>>, %arg10: memref<1x64xf32, #tpu.memory_space<vmem>>, %arg11: memref<64x32xf32, #tpu.memory_space<vmem>>, %arg12: memref<1x32xf32, #tpu.memory_space<vmem>>, %arg13: memref<32x128xf32, #tpu.memory_space<vmem>>, %arg14: memref<1x128xf32, #tpu.memory_space<vmem>>, %arg15: memref<2x128xf32, #tpu.memory_space<vmem>>) attributes {dimension_semantics = [#tpu.dimension_semantics<parallel>], iteration_bounds = array<i64: 1>, scalar_prefetch = 0 : i64, scratch_operands = 0 : i64, tpu.core_type = #tpu.core_type<tc>, window_params = [{transform_indices = @transform_0, window_bounds = array<i64: 2, 16, 4>}, {pipeline_mode = #tpu.pipeline_mode<synchronous>, transform_indices = @transform_1, window_bounds = array<i64: 4, 32>}, {pipeline_mode = #tpu.pipeline_mode<synchronous>, transform_indices = @transform_2, window_bounds = array<i64: 4, 32>}, {pipeline_mode = #tpu.pipeline_mode<synchronous>, transform_indices = @transform_3, window_bounds = array<i64: 1, 32>}, {pipeline_mode = #tpu.pipeline_mode<synchronous>, transform_indices = @transform_4, window_bounds = array<i64: 32, 64>}, {pipeline_mode = #tpu.pipeline_mode<synchronous>, transform_indices = @transform_5, window_bounds = array<i64: 32, 64>}, {pipeline_mode = #tpu.pipeline_mode<synchronous>, transform_indices = @transform_6, window_bounds = array<i64: 1, 64>}, {pipeline_mode = #tpu.pipeline_mode<synchronous>, transform_indices = @transform_7, window_bounds = array<i64: 64, 64>}, {pipeline_mode = #tpu.pipeline_mode<synchronous>, transform_indices = @transform_8, window_bounds = array<i64: 64, 64>}, {pipeline_mode = #tpu.pipeline_mode<synchronous>, transform_indices = @transform_9, window_bounds = array<i64: 1, 64>}, {pipeline_mode = #tpu.pipeline_mode<synchronous>, transform_indices = @transform_10, window_bounds = array<i64: 64, 32>}, {pipeline_mode = #tpu.pipeline_mode<synchronous>, transform_indices = @transform_11, window_bounds = array<i64: 1, 32>}, {pipeline_mode = #tpu.pipeline_mode<synchronous>, transform_indices = @transform_12, window_bounds = array<i64: 32, 128>}, {pipeline_mode = #tpu.pipeline_mode<synchronous>, transform_indices = @transform_13, window_bounds = array<i64: 1, 128>}, {transform_indices = @transform_14, window_bounds = array<i64: 2, 128>}]} {
    %c0 = arith.constant 0 : index
    %c0_0 = arith.constant 0 : index
    %c0_1 = arith.constant 0 : index
    %0 = vector.load %arg1[%c0, %c0_0, %c0_1] : memref<2x16x4xf32, #tpu.memory_space<vmem>>, vector<2x16x4xf32>
    %cst = arith.constant dense<0xFF800000> : vector<2x4xf32>
    %1 = vector.multi_reduction <maximumf>, %0, %cst [1] : vector<2x16x4xf32> to vector<2x4xf32>
    %2 = vector.shape_cast %0 : vector<2x16x4xf32> to vector<32x4xf32>
    %c0_2 = arith.constant 0 : index
    %c0_3 = arith.constant 0 : index
    %3 = vector.load %arg2[%c0_2, %c0_3] : memref<4x32xf32, #tpu.memory_space<vmem>>, vector<4x32xf32>
    %cst_4 = arith.constant dense<0.000000e+00> : vector<32x32xf32>
    %4 = tpu.matmul %2, %3, %cst_4 {dimension_numbers = #tpu.dot_dimension_numbers<[1], [0], [0], [1], [0, 0, 1, 1], [], []>} : vector<32x4xf32>, vector<4x32xf32>, vector<32x32xf32> -> vector<32x32xf32>
    %c0_5 = arith.constant 0 : index
    %c0_6 = arith.constant 0 : index
    %5 = vector.load %arg3[%c0_5, %c0_6] : memref<4x32xf32, #tpu.memory_space<vmem>>, vector<4x32xf32>
    %cst_7 = arith.constant dense<0.000000e+00> : vector<2x32xf32>
    %6 = tpu.matmul %1, %5, %cst_7 {dimension_numbers = #tpu.dot_dimension_numbers<[1], [0], [0], [1], [0, 0, 1, 1], [], []>} : vector<2x4xf32>, vector<4x32xf32>, vector<2x32xf32> -> vector<2x32xf32>
    %c0_8 = arith.constant 0 : index
    %c0_9 = arith.constant 0 : index
    %7 = vector.load %arg4[%c0_8, %c0_9] : memref<1x32xf32, #tpu.memory_space<vmem>>, vector<1x32xf32>
    %8 = vector.broadcast %7 : vector<1x32xf32> to vector<2x32xf32>
    %9 = arith.subf %6, %8 : vector<2x32xf32>
    %10 = vector.shape_cast %4 : vector<32x32xf32> to vector<2x16x32xf32>
    %11 = vector.shape_cast %9 : vector<2x32xf32> to vector<2x1x32xf32>
    %12 = vector.broadcast %11 : vector<2x1x32xf32> to vector<2x16x32xf32>
    %13 = arith.subf %10, %12 : vector<2x16x32xf32>
    %cst_10 = arith.constant 0.000000e+00 : f32
    %14 = vector.broadcast %cst_10 : f32 to vector<2x16x32xf32>
    %15 = arith.maximumf %13, %14 : vector<2x16x32xf32>
    %cst_11 = arith.constant dense<0xFF800000> : vector<2x32xf32>
    %16 = vector.multi_reduction <maximumf>, %15, %cst_11 [1] : vector<2x16x32xf32> to vector<2x32xf32>
    %17 = vector.shape_cast %15 : vector<2x16x32xf32> to vector<32x32xf32>
    %c0_12 = arith.constant 0 : index
    %c0_13 = arith.constant 0 : index
    %18 = vector.load %arg5[%c0_12, %c0_13] : memref<32x64xf32, #tpu.memory_space<vmem>>, vector<32x64xf32>
    %cst_14 = arith.constant dense<0.000000e+00> : vector<32x64xf32>
    %19 = tpu.matmul %17, %18, %cst_14 {dimension_numbers = #tpu.dot_dimension_numbers<[1], [0], [0], [1], [0, 0, 1, 1], [], []>} : vector<32x32xf32>, vector<32x64xf32>, vector<32x64xf32> -> vector<32x64xf32>
    %c0_15 = arith.constant 0 : index
    %c0_16 = arith.constant 0 : index
    %20 = vector.load %arg6[%c0_15, %c0_16] : memref<32x64xf32, #tpu.memory_space<vmem>>, vector<32x64xf32>
    %cst_17 = arith.constant dense<0.000000e+00> : vector<2x64xf32>
    %21 = tpu.matmul %16, %20, %cst_17 {dimension_numbers = #tpu.dot_dimension_numbers<[1], [0], [0], [1], [0, 0, 1, 1], [], []>} : vector<2x32xf32>, vector<32x64xf32>, vector<2x64xf32> -> vector<2x64xf32>
    %c0_18 = arith.constant 0 : index
    %c0_19 = arith.constant 0 : index
    %22 = vector.load %arg7[%c0_18, %c0_19] : memref<1x64xf32, #tpu.memory_space<vmem>>, vector<1x64xf32>
    %23 = vector.broadcast %22 : vector<1x64xf32> to vector<2x64xf32>
    %24 = arith.subf %21, %23 : vector<2x64xf32>
    %25 = vector.shape_cast %19 : vector<32x64xf32> to vector<2x16x64xf32>
    %26 = vector.shape_cast %24 : vector<2x64xf32> to vector<2x1x64xf32>
    %27 = vector.broadcast %26 : vector<2x1x64xf32> to vector<2x16x64xf32>
    %28 = arith.subf %25, %27 : vector<2x16x64xf32>
    %cst_20 = arith.constant 0.000000e+00 : f32
    %29 = vector.broadcast %cst_20 : f32 to vector<2x16x64xf32>
    %30 = arith.maximumf %28, %29 : vector<2x16x64xf32>
    %cst_21 = arith.constant dense<0xFF800000> : vector<2x64xf32>
    %31 = vector.multi_reduction <maximumf>, %30, %cst_21 [1] : vector<2x16x64xf32> to vector<2x64xf32>
    %32 = vector.shape_cast %30 : vector<2x16x64xf32> to vector<32x64xf32>
    %c0_22 = arith.constant 0 : index
    %c0_23 = arith.constant 0 : index
    %33 = vector.load %arg8[%c0_22, %c0_23] : memref<64x64xf32, #tpu.memory_space<vmem>>, vector<64x64xf32>
    %cst_24 = arith.constant dense<0.000000e+00> : vector<32x64xf32>
    %34 = tpu.matmul %32, %33, %cst_24 {dimension_numbers = #tpu.dot_dimension_numbers<[1], [0], [0], [1], [0, 0, 1, 1], [], []>} : vector<32x64xf32>, vector<64x64xf32>, vector<32x64xf32> -> vector<32x64xf32>
    %c0_25 = arith.constant 0 : index
    %c0_26 = arith.constant 0 : index
    %35 = vector.load %arg9[%c0_25, %c0_26] : memref<64x64xf32, #tpu.memory_space<vmem>>, vector<64x64xf32>
    %cst_27 = arith.constant dense<0.000000e+00> : vector<2x64xf32>
    %36 = tpu.matmul %31, %35, %cst_27 {dimension_numbers = #tpu.dot_dimension_numbers<[1], [0], [0], [1], [0, 0, 1, 1], [], []>} : vector<2x64xf32>, vector<64x64xf32>, vector<2x64xf32> -> vector<2x64xf32>
    %c0_28 = arith.constant 0 : index
    %c0_29 = arith.constant 0 : index
    %37 = vector.load %arg10[%c0_28, %c0_29] : memref<1x64xf32, #tpu.memory_space<vmem>>, vector<1x64xf32>
    %38 = vector.broadcast %37 : vector<1x64xf32> to vector<2x64xf32>
    %39 = arith.subf %36, %38 : vector<2x64xf32>
    %40 = vector.shape_cast %34 : vector<32x64xf32> to vector<2x16x64xf32>
    %41 = vector.shape_cast %39 : vector<2x64xf32> to vector<2x1x64xf32>
    %42 = vector.broadcast %41 : vector<2x1x64xf32> to vector<2x16x64xf32>
    %43 = arith.subf %40, %42 : vector<2x16x64xf32>
    %cst_30 = arith.constant 0.000000e+00 : f32
    %44 = vector.broadcast %cst_30 : f32 to vector<2x16x64xf32>
    %45 = arith.maximumf %43, %44 : vector<2x16x64xf32>
    %cst_31 = arith.constant dense<0xFF800000> : vector<2x64xf32>
    %46 = vector.multi_reduction <maximumf>, %45, %cst_31 [1] : vector<2x16x64xf32> to vector<2x64xf32>
    %c0_32 = arith.constant 0 : index
    %c0_33 = arith.constant 0 : index
    %47 = vector.load %arg11[%c0_32, %c0_33] : memref<64x32xf32, #tpu.memory_space<vmem>>, vector<64x32xf32>
    %cst_34 = arith.constant dense<0.000000e+00> : vector<2x32xf32>
    %48 = tpu.matmul %46, %47, %cst_34 {dimension_numbers = #tpu.dot_dimension_numbers<[1], [0], [0], [1], [0, 0, 1, 1], [], []>} : vector<2x64xf32>, vector<64x32xf32>, vector<2x32xf32> -> vector<2x32xf32>
    %c0_35 = arith.constant 0 : index
    %c0_36 = arith.constant 0 : index
    %49 = vector.load %arg12[%c0_35, %c0_36] : memref<1x32xf32, #tpu.memory_space<vmem>>, vector<1x32xf32>
    %50 = vector.broadcast %49 : vector<1x32xf32> to vector<2x32xf32>
    %51 = arith.addf %48, %50 : vector<2x32xf32>
    %cst_37 = arith.constant 0.000000e+00 : f32
    %52 = vector.broadcast %cst_37 : f32 to vector<2x32xf32>
    %53 = arith.maximumf %51, %52 : vector<2x32xf32>
    %c0_38 = arith.constant 0 : index
    %c0_39 = arith.constant 0 : index
    %54 = vector.load %arg13[%c0_38, %c0_39] : memref<32x128xf32, #tpu.memory_space<vmem>>, vector<32x128xf32>
    %cst_40 = arith.constant dense<0.000000e+00> : vector<2x128xf32>
    %55 = tpu.matmul %53, %54, %cst_40 {dimension_numbers = #tpu.dot_dimension_numbers<[1], [0], [0], [1], [0, 0, 1, 1], [], []>} : vector<2x32xf32>, vector<32x128xf32>, vector<2x128xf32> -> vector<2x128xf32>
    %c0_41 = arith.constant 0 : index
    %c0_42 = arith.constant 0 : index
    %56 = vector.load %arg14[%c0_41, %c0_42] : memref<1x128xf32, #tpu.memory_space<vmem>>, vector<1x128xf32>
    %57 = vector.broadcast %56 : vector<1x128xf32> to vector<2x128xf32>
    %58 = arith.addf %55, %57 : vector<2x128xf32>
    %c0_43 = arith.constant 0 : index
    %c0_44 = arith.constant 0 : index
    %59 = vector.load %arg15[%c0_43, %c0_44] : memref<2x128xf32, #tpu.memory_space<vmem>>, vector<2x128xf32>
    tpu.vector_store %arg15[%c0_43, %c0_44], %58 {strides = array<i32>} : memref<2x128xf32, #tpu.memory_space<vmem>>, vector<2x128xf32>,
    return
  }
  func.func @transform_0(%arg0: i32) -> (i32, i32, i32) {
    %c0_i32 = arith.constant 0 : i32
    %c0_i32_0 = arith.constant 0 : i32
    %c0_i32_1 = arith.constant 0 : i32
    return %arg0, %c0_i32, %c0_i32_0 : i32, i32, i32
  }
  func.func @transform_1(%arg0: i32) -> (i32, i32) {
    %c0_i32 = arith.constant 0 : i32
    %c0_i32_0 = arith.constant 0 : i32
    %c0_i32_1 = arith.constant 0 : i32
    return %c0_i32, %c0_i32_0 : i32, i32
  }
  func.func @transform_2(%arg0: i32) -> (i32, i32) {
    %c0_i32 = arith.constant 0 : i32
    %c0_i32_0 = arith.constant 0 : i32
    %c0_i32_1 = arith.constant 0 : i32
    return %c0_i32, %c0_i32_0 : i32, i32
  }
  func.func @transform_3(%arg0: i32) -> (i32, i32) {
    %c0_i32 = arith.constant 0 : i32
    %c0_i32_0 = arith.constant 0 : i32
    %c0_i32_1 = arith.constant 0 : i32
    return %c0_i32, %c0_i32_0 : i32, i32
  }
  func.func @transform_4(%arg0: i32) -> (i32, i32) {
    %c0_i32 = arith.constant 0 : i32
    %c0_i32_0 = arith.constant 0 : i32
    %c0_i32_1 = arith.constant 0 : i32
    return %c0_i32, %c0_i32_0 : i32, i32
  }
  func.func @transform_5(%arg0: i32) -> (i32, i32) {
    %c0_i32 = arith.constant 0 : i32
    %c0_i32_0 = arith.constant 0 : i32
    %c0_i32_1 = arith.constant 0 : i32
    return %c0_i32, %c0_i32_0 : i32, i32
  }
  func.func @transform_6(%arg0: i32) -> (i32, i32) {
    %c0_i32 = arith.constant 0 : i32
    %c0_i32_0 = arith.constant 0 : i32
    %c0_i32_1 = arith.constant 0 : i32
    return %c0_i32, %c0_i32_0 : i32, i32
  }
  func.func @transform_7(%arg0: i32) -> (i32, i32) {
    %c0_i32 = arith.constant 0 : i32
    %c0_i32_0 = arith.constant 0 : i32
    %c0_i32_1 = arith.constant 0 : i32
    return %c0_i32, %c0_i32_0 : i32, i32
  }
  func.func @transform_8(%arg0: i32) -> (i32, i32) {
    %c0_i32 = arith.constant 0 : i32
    %c0_i32_0 = arith.constant 0 : i32
    %c0_i32_1 = arith.constant 0 : i32
    return %c0_i32, %c0_i32_0 : i32, i32
  }
  func.func @transform_9(%arg0: i32) -> (i32, i32) {
    %c0_i32 = arith.constant 0 : i32
    %c0_i32_0 = arith.constant 0 : i32
    %c0_i32_1 = arith.constant 0 : i32
    return %c0_i32, %c0_i32_0 : i32, i32
  }
  func.func @transform_10(%arg0: i32) -> (i32, i32) {
    %c0_i32 = arith.constant 0 : i32
    %c0_i32_0 = arith.constant 0 : i32
    %c0_i32_1 = arith.constant 0 : i32
    return %c0_i32, %c0_i32_0 : i32, i32
  }
  func.func @transform_11(%arg0: i32) -> (i32, i32) {
    %c0_i32 = arith.constant 0 : i32
    %c0_i32_0 = arith.constant 0 : i32
    %c0_i32_1 = arith.constant 0 : i32
    return %c0_i32, %c0_i32_0 : i32, i32
  }
  func.func @transform_12(%arg0: i32) -> (i32, i32) {
    %c0_i32 = arith.constant 0 : i32
    %c0_i32_0 = arith.constant 0 : i32
    %c0_i32_1 = arith.constant 0 : i32
    return %c0_i32, %c0_i32_0 : i32, i32
  }
  func.func @transform_13(%arg0: i32) -> (i32, i32) {
    %c0_i32 = arith.constant 0 : i32
    %c0_i32_0 = arith.constant 0 : i32
    %c0_i32_1 = arith.constant 0 : i32
    return %c0_i32, %c0_i32_0 : i32, i32
  }
  func.func @transform_14(%arg0: i32) -> (i32, i32) {
    %c0_i32 = arith.constant 0 : i32
    %c0_i32_0 = arith.constant 0 : i32
    return %arg0, %c0_i32 : i32, i32
  }
}

</mosaic_0001>

<bundles_post_ra>
// kernel: tpu_custom_call.1
= control target key start
LH: loop header
LB: loop body
LE: loop exit
PB: predicated region body
PF: predicated region fallthrough
CT: control target
= control target key end

     0   :  { %19 = vsyncpa [#allocation3], 0  ;;  %s1830_s0 = inlined_call_operand.vmem [shape: f32[2,16,4], index: 0, kind: input, shape index: {}]   ;;  %s1831_s1 = inlined_call_operand.hbm [shape: f32[4,32], index: 1, kind: input, shape index: {}]   ;;  %s1832_s2 = inlined_call_operand.hbm [shape: f32[4,32], index: 2, kind: input, shape index: {}]   ;;  %s1833_s3 = inlined_call_operand.vmem [shape: f32[1,32], index: 3, kind: input, shape index: {}]   ;;  %s1834_s4 = inlined_call_operand.hbm [shape: f32[32,64], index: 4, kind: input, shape index: {}]   ;;  %s1835_s5 = inlined_call_operand.hbm [shape: f32[32,64], index: 5, kind: input, shape index: {}]   ;;  %s1836_s6 = inlined_call_operand.vmem [shape: f32[1,64], index: 6, kind: input, shape index: {}]   ;;  %s1837_s7 = inlined_call_operand.vmem [shape: f32[64,64], index: 7, kind: input, shape index: {}]   ;;  %s1838_s8 = inlined_call_operand.vmem [shape: f32[64,64], index: 8, kind: input, shape index: {}]   ;;  %s1839_s9 = inlined_call_operand.vmem [shape: f32[1,64], index: 9, kind: input, shape index: {}]   ;;  %s1840_s10 = inlined_call_operand.vmem [shape: f32[64,32], index: 10, kind: input, shape index: {}]   ;;  %s1841_s11 = inlined_call_operand.vmem [shape: f32[1,32], index: 11, kind: input, shape index: {}]   ;;  %s1842_s12 = inlined_call_operand.hbm [shape: f32[32,128], index: 12, kind: input, shape index: {}]   ;;  %s1843_s13 = inlined_call_operand.vmem [shape: f32[1,128], index: 13, kind: input, shape index: {}]   ;;  %s1844_s14 = inlined_call_operand.hbm [shape: f32[2,128], index: 14, kind: output, shape index: {}]  }
   0x1   :  { %20 = vsyncpa [#allocation6], 0 }
   0x2   :  { %21 = vsyncpa [#allocation9], 0 }
   0x3   :  { %22 = vsyncpa [#allocation4], 0  ;;  %s1481_s29 = smov [#allocation5]   ;;  %s1341_s17 = scalar_lea.hbm %s1832_s2, 64 }
   0x4   :  { %s41_s30 = sshll.u32 %s1481_s29, 4  ;;  %p1342_p0 = scmp.ne.s32.totalorder %s1832_s2, %s1341_s17  ;;  %s42_s30 = int_to_ptr.vmem [resolvable:$true] %s41_s30 }
   0x5   :  { %p1345_p1 = scmp.lt.u32.totalorder %s1341_s17, %s1832_s2 }
   0x7   :  { %p1347_p2 = pnand %p1345_p1, %p1342_p0 }
   0x9   :  { %1350 = shalt.err (!%p1347_p2)
}
   0xa   :  { %s1351_s22 = scalar_lea.vmem %s42_s30, 64  ;;  %p1356_p4 = scmp.lt.s32.totalorder %s42_s30, %s42_s30 }
   0xb   :  { %p1352_p3 = scmp.ne.s32.totalorder %s42_s30, %s1351_s22  ;;  %p1357_p5 = scmp.lt.s32.totalorder %s1351_s22, %s1351_s22 }
   0xd   :  { %p1358_p6 = por %p1357_p5, %p1356_p4 }
   0xf   :  { %p1359_p7 = pnand %p1358_p6, %p1352_p3 }
  0x11   :  { %1362 = shalt.err (!%p1359_p7)
}
  0x12   :  { %44 = dma.hbm_to_vmem [thread:$0]  %s1832_s2, 64, %s42_s30, [#allocation6]  }
  0x13   :  { %s1482_s25 = smov [#allocation8]   ;;  %s1483_s27 = smov [#allocation2]  }
  0x14   :  { %s64_s26 = sshll.u32 %s1482_s25, 4  ;;  %s31_s28 = sshll.u32 %s1483_s27, 4  ;;  %s65_s26 = int_to_ptr.vmem [resolvable:$true] %s64_s26  ;;  %s32_s28 = int_to_ptr.vmem [resolvable:$true] %s31_s28 }
  0x15   :  { %s1363_s16 = scalar_lea.hbm %s1835_s5, 512 }
  0x16   :  { %p1364_p8 = scmp.ne.s32.totalorder %s1835_s5, %s1363_s16  ;;  %p1367_p9 = scmp.lt.u32.totalorder %s1363_s16, %s1835_s5 }
  0x18   :  { %p1369_p10 = pnand %p1367_p9, %p1364_p8 }
  0x1a   :  { %1372 = shalt.err (!%p1369_p10)
}
  0x1b   :  { %s1373_s2 = scalar_lea.vmem %s65_s26, 512  ;;  %p1378_p12 = scmp.lt.s32.totalorder %s65_s26, %s65_s26 }
  0x1c   :  { %p1374_p11 = scmp.ne.s32.totalorder %s65_s26, %s1373_s2  ;;  %p1379_p13 = scmp.lt.s32.totalorder %s1373_s2, %s1373_s2 }
  0x1e   :  { %p1380_p0 = por %p1379_p13, %p1378_p12 }
  0x20   :  { %p1381_p1 = pnand %p1380_p0, %p1374_p11 }
  0x22   :  { %1384 = shalt.err (!%p1381_p1)
}
  0x23   :  { %s1484_s30 = smov 128   ;;  %s1485_s21 = smov 8  }
  0x24   :  { %70 = dma.hbm_to_vmem [thread:$0]  %s1835_s5, 512, %s65_s26, [#allocation9], %s1484_s30, %s1484_s30, %s1485_s21  }
  0x25   :  { %s1385_s27 = scalar_lea.hbm %s1831_s1, 64 }
  0x26   :  { %p1386_p2 = scmp.ne.s32.totalorder %s1831_s1, %s1385_s27  ;;  %p1389_p3 = scmp.lt.u32.totalorder %s1385_s27, %s1831_s1 }
  0x28   :  { %p1391_p4 = pnand %p1389_p3, %p1386_p2 }
  0x2a   :  { %1394 = shalt.err (!%p1391_p4)
}
  0x2b   :  { %s1395_s18 = scalar_lea.vmem %s32_s28, 64  ;;  %p1400_p6 = scmp.lt.s32.totalorder %s32_s28, %s32_s28 }
  0x2c   :  { %p1396_p5 = scmp.ne.s32.totalorder %s32_s28, %s1395_s18  ;;  %p1401_p7 = scmp.lt.s32.totalorder %s1395_s18, %s1395_s18 }
  0x2e   :  { %p1402_p8 = por %p1401_p7, %p1400_p6 }
  0x30   :  { %p1403_p9 = pnand %p1402_p8, %p1396_p5 }
  0x32   :  { %1406 = shalt.err (!%p1403_p9)
}
  0x33   :  { %34 = dma.hbm_to_vmem [thread:$0]  %s1831_s1, 64, %s32_s28, [#allocation3]  }
  0x34   :  { %s1486_s19 = smov [#allocation7]   ;;  %s1487_s2 = smov [#allocation10]  }
  0x35   :  { %s52_s20 = sshll.u32 %s1486_s19, 4  ;;  %s88_s22 = sshll.u32 %s1487_s2, 4  ;;  %s53_s20 = int_to_ptr.vmem [resolvable:$true] %s52_s20  ;;  %s89_s22 = int_to_ptr.vmem [resolvable:$true] %s88_s22 }
  0x36   :  { %s1407_s25 = scalar_lea.hbm %s1834_s4, 512 }
  0x37   :  { %p1408_p10 = scmp.ne.s32.totalorder %s1834_s4, %s1407_s25  ;;  %p1411_p11 = scmp.lt.u32.totalorder %s1407_s25, %s1834_s4 }
  0x39   :  { %p1413_p12 = pnand %p1411_p11, %p1408_p10 }
  0x3b   :  { %1416 = shalt.err (!%p1413_p12)
}
  0x3c   :  { %s1417_s1 = scalar_lea.vmem %s53_s20, 512  ;;  %p1422_p0 = scmp.lt.s32.totalorder %s53_s20, %s53_s20 }
  0x3d   :  { %p1418_p13 = scmp.ne.s32.totalorder %s53_s20, %s1417_s1  ;;  %p1423_p1 = scmp.lt.s32.totalorder %s1417_s1, %s1417_s1 }
  0x3f   :  { %p1424_p2 = por %p1423_p1, %p1422_p0 }
  0x41   :  { %p1425_p3 = pnand %p1424_p2, %p1418_p13 }
  0x43   :  { %1428 = shalt.err (!%p1425_p3)
}
  0x44   :  { %58 = dma.hbm_to_vmem [thread:$0]  %s1834_s4, 512, %s53_s20, [#allocation6], %s1484_s30, %s1484_s30, %s1485_s21  }
  0x45   :  { %s1429_s26 = scalar_lea.hbm %s1842_s12, 512 }
  0x46   :  { %p1430_p4 = scmp.ne.s32.totalorder %s1842_s12, %s1429_s26  ;;  %p1433_p5 = scmp.lt.u32.totalorder %s1429_s26, %s1842_s12 }
  0x48   :  { %p1435_p6 = pnand %p1433_p5, %p1430_p4 }
  0x4a   :  { %1438 = shalt.err (!%p1435_p6)
}
  0x4b   :  { %s1439_s25 = scalar_lea.vmem %s89_s22, 512  ;;  %p1444_p8 = scmp.lt.s32.totalorder %s89_s22, %s89_s22 }
  0x4c   :  { %p1440_p7 = scmp.ne.s32.totalorder %s89_s22, %s1439_s25  ;;  %p1445_p9 = scmp.lt.s32.totalorder %s1439_s25, %s1439_s25 }
  0x4e   :  { %p1446_p10 = por %p1445_p9, %p1444_p8 }
  0x50   :  { %p1447_p11 = pnand %p1446_p10, %p1440_p7 }
  0x52   :  { %1450 = shalt.err (!%p1447_p11)
}
  0x53   :  { %94 = dma.hbm_to_vmem [thread:$0]  %s1842_s12, 512, %s89_s22, [#allocation9], %s1484_s30, %s1484_s30, %s1485_s21  }
  0x54   :  { %1473 = dma.done.wait [#allocation3], 64  }
  0x55   :  { %1474 = vsyncadd [#allocation3], 4294967232 }
  0x56   :  { %1475 = dma.done.wait [#allocation6], 576  }
  0x57   :  { %1476 = vsyncadd [#allocation6], 4294966720 }
  0x58   :  { %1477 = dma.done.wait [#allocation9], 1024  }
  0x59   :  { %1478 = vsyncadd [#allocation9], 4294966272  ;;  %v1488_v0 = vmov 0.0   ;;  %vm1489_vm0 = vmmov 0   ;;  %vm148_vm1 = vcmask 1043456   ;;  %vm116_vm2 = vcmask 31744  }
  0x5a   :  { %1168 = vmatprep.subr.mxu1 %v1488_v0  ;;  %1170 = vmatprep.mubr.msk.f32.mxu1 %vm1489_vm0, %v1488_v0  ;;  %v237_v1 = vld [vmem:[#allocation5] sm:$0xf]  ;;  %v113_v3 = vld [vmem:[%s1830_s0 + $0x8] sm:$0xff]  ;;  %v114_v4 = vld [vmem:[%s1830_s0 + $0x10] sm:$0xff]  ;;  %vm240_vm3 = vcmask 1041409   ;;  %v1490_v35 = vmov 0.0|0.0   ;;  %v329_v44 = vlaneseq }
  0x5b   :  { %v112_v2 = vld [vmem:[%s1830_s0] sm:$0xff]  ;;  %1169 = vmatpush3.msk.msra.mxu1 %vm148_vm1, %v237_v1  ;;  %v115_v5 = vld [vmem:[%s1830_s0 + $0x18] sm:$0xff]  ;;  %v118_v7 = vsel %vm116_vm2, %v113_v3, -inf  ;;  %v126_v10 = vsel %vm116_vm2, %v114_v4, -inf  ;;  %v385_v26 = vld [vmem:[#allocation7] sm:$0xff]  ;;  %vm366_vm4 = vcmask 261120  }
  0x5c   :  { %v117_v6 = vsel %vm116_vm2, %v112_v2, -inf  ;;  %v135_v8 = vld [vmem:[#allocation2] sm:$0xf]  ;;  %1162 = vmatprep.mubr.msk.f32.mxu0 %vm116_vm2, %v112_v2  ;;  %v127_v11 = vsel %vm116_vm2, %v115_v5, -inf  ;;  %v386_v27 = vld [vmem:[#allocation7 + $0x8] sm:$0xff]  ;;  %v387_v29 = vld [vmem:[#allocation7 + $0x10] sm:$0xff]  ;;  %1277 = vmatprep.subr.bf16.mxu1 %v1490_v35 }
  0x5d   :  { %v119_v9 = vmax.f32 %v117_v6, %v118_v7  ;;  %1160 = vmatprep.subr.msk.mxu0 %vm148_vm1, %v135_v8  ;;  %v128_v12 = vmax.f32 %v126_v10, %v127_v11  ;;  %v1269_v28 = vpack.c.bf16 %v386_v27, %v385_v26  ;;  %v388_v30 = vld [vmem:[#allocation7 + $0x18] sm:$0xff]  ;;  %v486_v32 = vld [vmem:[#allocation8] sm:$0xff]  ;;  %v487_v33 = vld [vmem:[#allocation8 + $0x8] sm:$0xff]  ;;  %v1491_v42 = vmov 1966171168   ;;  %s1492_s5 = smov [#allocation11]  }
  0x5e   :  { %1161 = vmatpush3.msk.msra.mxu0 %vm148_vm1, %v135_v8  ;;  %v1273_v31 = vpack.c.bf16 %v388_v30, %v387_v29  ;;  %v1278_v34 = vpack.c.bf16 %v487_v33, %v486_v32  ;;  %v488_v36 = vld [vmem:[#allocation8 + $0x10] sm:$0xff]  ;;  %v489_v37 = vld [vmem:[#allocation8 + $0x18] sm:$0xff]  ;;  %v327_v43 = vunpack.c.l.s4 %v1491_v42  ;;  %v330_v47 = vshrl.u32 %v329_v44, 7  ;;  %v635_v27 = vld [vmem:[%s1837_s7 + $0x10] sm:$0xff]  ;;  %s1070_s26 = sshll.u32 %s1492_s5, 4  ;;  %s1071_s26 = int_to_ptr.vmem [resolvable:$true] %s1070_s26 }
  0x5f   :  { %v120_v13 = vrot.slane %v119_v9, 4  ;;  %1163 = vmatmul.mubr.msk.f32.vlgmr.msra.gmra.mrb[0].mxu0 %vm116_vm2, %v113_v3  ;;  %v129_v14 = vrot.slane %v128_v12, 4  ;;  %1270 = vmatprep.subr.bf16.mxu0 %v1269_v28  ;;  %v1281_v38 = vpack.c.bf16 %v489_v37, %v488_v36  ;;  %v1088_v48 = vld [vmem:[%s1833_s3] ss:$0 sm:$0xff]  ;;  %v639_v33 = vld [vmem:[%s1837_s7 + $0x30] sm:$0xff]  ;;  %v743_v44 = vld [vmem:[%s1838_s8 + $0x28] sm:$0xff]  ;;  %p1456_p13 = scmp.lt.s32.totalorder %s1071_s26, %s1071_s26 }
  0x60   :  { %1165 = vmatprep.mubr.msk.f32.mxu0 %vm116_vm2, %v114_v4  ;;  %1272 = vmatpush3.bf16.msra.mxu0 %v1269_v28  ;;  %v328_v46 = vunpack.c.0.s8 %v327_v43  ;;  %v1676_v54 = vsub.s32 0, %v330_v47  ;;  %v636_v28 = vld [vmem:[%s1837_s7 + $0x18] sm:$0xff]  ;;  %v637_v30 = vld [vmem:[%s1837_s7 + $0x20] sm:$0xff]  ;;  %vm614_vm5 = vcmask 523264   ;;  %s1451_s19 = scalar_lea.vmem %s1071_s26, 32 }
  0x61   :  { %v121_v15 = vmax.f32 %v119_v9, %v120_v13  ;;  %v130_v16 = vmax.f32 %v128_v12, %v129_v14  ;;  %1274 = vmatprep.subr.bf16.mxu0 %v1273_v31  ;;  %v1287_v29 = vpack.c.bf16 %v636_v28, %v635_v27  ;;  %v738_v37 = vld [vmem:[%s1838_s8] sm:$0xff]  ;;  %p1452_p12 = scmp.ne.s32.totalorder %s1071_s26, %s1451_s19  ;;  %p1457_p0 = scmp.lt.s32.totalorder %s1451_s19, %s1451_s19 }
  0x62   :  { %v1673_v49 = vsub.s32 %v328_v46, %v330_v47  ;;  %v742_v43 = vld [vmem:[%s1838_s8 + $0x20] sm:$0xff]  ;;  %v744_v46 = vld [vmem:[%s1838_s8 + $0x30] sm:$0xff]  ;;  %v745_v47 = vld [vmem:[%s1838_s8 + $0x38] sm:$0xff] }
  0x63   :  { %v122_v17 = vrot.slane %v121_v15, 2  ;;  %1166 = vmatmul.mubr.msk.f32.gmra.mrb[2].mxu0 %vm116_vm2, %v115_v5  ;;  %v131_v18 = vrot.slane %v130_v16, 2  ;;  %p1458_p1 = por %p1457_p0, %p1456_p13 }
  0x64   :  { %1276 = vmatpush3.bf16.msra.mxu0 %v1273_v31  ;;  %v638_v31 = vld [vmem:[%s1837_s7 + $0x28] sm:$0xff] }
  0x65   :  { %v123_v19 = vmax.f32 %v121_v15, %v122_v17  ;;  %v132_v20 = vmax.f32 %v130_v16, %v131_v18  ;;  %v1291_v32 = vpack.c.bf16 %v638_v31, %v637_v30  ;;  %v889_v30 = vld [vmem:[%s1840_s10 + $0x8] sm:$0xff]  ;;  %p1459_p2 = pnand %p1458_p1, %p1452_p12 }
  0x67   :  { %v124_v21 = vrot.slane %v123_v19, 1  ;;  %v133_v22 = vrot.slane %v132_v20, 1 }
  0x69   :  { %v125_v23 = vmax.f32 %v123_v19, %v124_v21  ;;  %v134_v24 = vmax.f32 %v132_v20, %v133_v22 }
  0x6b   :  { %v241_v25 = vsel %vm240_vm3, %v134_v24, %v125_v23  ;;  %v633_v24 = vld [vmem:[%s1837_s7] sm:$0xff] }
  0x6c   :  { %1171 = vmatmul.mubr.msk.f32.vlgmr.msra.gmra.mrb[0].mxu1 %vm116_vm2, %v241_v25  ;;  %v634_v25 = vld [vmem:[%s1837_s7 + $0x8] sm:$0xff] }
  0x6d   :  { %1195 = vmatprep.mubr.msk.f32.mxu1 %vm1489_vm0, %v1488_v0  ;;  %1279 = vmatpush3.bf16.msra.mxu1 %v1278_v34  ;;  %v1283_v26 = vpack.c.bf16 %v634_v25, %v633_v24  ;;  %v640_v34 = vld [vmem:[%s1837_s7 + $0x38] sm:$0xff] }
  0x6e   :  { %1280 = vmatprep.subr.bf16.mxu1 %v1490_v35  ;;  %v1295_v36 = vpack.c.bf16 %v640_v34, %v639_v33  ;;  %v892_v34 = vld [vmem:[%s1840_s10 + $0x20] sm:$0xff] }
  0x6f   :  { %1284 = vmatprep.subr.bf16.mxu0 %v1283_v26 }
  0x71   :  { %1282 = vmatpush3.bf16.msra.mxu1 %v1281_v38  ;;  %v739_v38 = vld [vmem:[%s1838_s8 + $0x8] sm:$0xff] }
  0x72   :  { %1299 = vmatprep.subr.bf16.mxu1 %v1490_v35 }
 0x132   :  { %v1164_v39 = vpop.f32.mrb[0].mxu0 }
 0x133   :  { %v218_v40 = vpop.f32.mrb[1].mxu0 }
 0x136   :  { %v1167_v41 = vpop.f32.mrb[2].mxu0 }
 0x137   :  { %v228_v45 = vpop.f32.mrb[3].mxu0 }
 0x13f   :  { %v313_v50 = vpop.f32.mrb[0].mxu1 }
 0x140   :  { %v324_v51 = vsub.f32 %v313_v50, %v1088_v48  ;;  %v1172_v52 = vpop.f32.mrb[1].mxu1  ;;  %v1309_v48 = vpack.c.bf16 %v745_v47, %v744_v46 }
 0x142   :  { %v332_v53 = vrot.slane %v324_v51, %v1673_v49 }
 0x144   :  { %v333_v55 = vcombine.high %v332_v53, %v332_v53  ;;  %v340_v56 = vrot.slane %v332_v53, %v1673_v49 }
 0x146   :  { %v351_v57 = vrot.slane %v340_v56, %v1676_v54  ;;  %v347_v58 = vrot.slane %v333_v55, %v1673_v49  ;;  %v1094_v55 = vld [vmem:[%s1836_s6] ss:$0 sm:$0xff] }
 0x148   :  { %v359_v59 = vsub.f32 %v1164_v39, %v351_v57  ;;  %v358_v60 = vsub.f32 %v218_v40, %v351_v57  ;;  %v355_v61 = vrot.slane %v347_v58, %v1676_v54  ;;  %v1300_v39 = vpack.c.bf16 %v739_v38, %v738_v37  ;;  %v740_v40 = vld [vmem:[%s1838_s8 + $0x10] sm:$0xff] }
 0x149   :  { %v894_v38 = vld [vmem:[%s1840_s10 + $0x30] sm:$0xff] }
 0x14a   :  { %v363_v62 = vmax.f32 %v359_v59, 0.0  ;;  %v362_v63 = vmax.f32 %v358_v60, 0.0  ;;  %v361_v1 = vsub.f32 %v1167_v41, %v355_v61  ;;  %v360_v2 = vsub.f32 %v228_v45, %v355_v61  ;;  %v741_v41 = vld [vmem:[%s1838_s8 + $0x18] sm:$0xff] }
 0x14b   :  { %v1303_v42 = vpack.c.bf16 %v741_v41, %v740_v40  ;;  %v1306_v45 = vpack.c.bf16 %v743_v44, %v742_v43  ;;  %v979_v41 = vld [vmem:[#allocation10] sm:$0xff] }
 0x14c   :  { %v368_v3 = vsel %vm366_vm4, %v363_v62, -inf  ;;  %v367_v4 = vsel %vm366_vm4, %v362_v63, -inf  ;;  %v365_v5 = vmax.f32 %v361_v1, 0.0  ;;  %v364_v6 = vmax.f32 %v360_v2, 0.0  ;;  %1181 = vmatprep.mubr.msk.f32.mxu0 %vm366_vm4, %v362_v63 }
 0x14d   :  { %v369_v7 = vmax.f32 %v367_v4, %v368_v3  ;;  %1182 = vmatmul.mubr.msk.f32.vlgmr.msra.gmra.mrb[4].mxu0 %vm366_vm4, %v363_v62 }
 0x14e   :  { %v377_v8 = vsel %vm366_vm4, %v365_v5, -inf  ;;  %v376_v9 = vsel %vm366_vm4, %v364_v6, -inf  ;;  %1184 = vmatprep.mubr.msk.f32.mxu0 %vm366_vm4, %v364_v6  ;;  %1286 = vmatpush3.bf16.msra.mxu0 %v1283_v26 }
 0x14f   :  { %v370_v10 = vrot.slane %v369_v7, 4  ;;  %v378_v11 = vmax.f32 %v376_v9, %v377_v8  ;;  %1288 = vmatprep.subr.bf16.mxu0 %v1287_v29 }
 0x151   :  { %v371_v12 = vmax.f32 %v369_v7, %v370_v10  ;;  %v379_v13 = vrot.slane %v378_v11, 4  ;;  %1185 = vmatmul.mubr.msk.f32.gmra.mrb[6].mxu0 %vm366_vm4, %v365_v5 }
 0x152   :  { %1290 = vmatpush3.bf16.msra.mxu0 %v1287_v29  ;;  %v888_v29 = vld [vmem:[%s1840_s10] sm:$0xff] }
 0x153   :  { %v372_v14 = vrot.slane %v371_v12, 2  ;;  %v380_v15 = vmax.f32 %v378_v11, %v379_v13  ;;  %1292 = vmatprep.subr.bf16.mxu0 %v1291_v32  ;;  %v1312_v31 = vpack.c.bf16 %v889_v30, %v888_v29  ;;  %v1103_v29 = vld [vmem:[%s1843_s13] ss:$0 sm:$0xff] }
 0x155   :  { %v373_v16 = vmax.f32 %v371_v12, %v372_v14  ;;  %v381_v17 = vrot.slane %v380_v15, 2 }
 0x156   :  { %1294 = vmatpush3.bf16.msra.mxu0 %v1291_v32  ;;  %v890_v32 = vld [vmem:[%s1840_s10 + $0x10] sm:$0xff] }
 0x157   :  { %v374_v18 = vrot.slane %v373_v16, 1  ;;  %v382_v19 = vmax.f32 %v380_v15, %v381_v17  ;;  %1296 = vmatprep.subr.bf16.mxu0 %v1295_v36 }
 0x159   :  { %v383_v20 = vrot.slane %v382_v19, 1  ;;  %v375_v21 = vmax.f32 %v373_v16, %v374_v18 }
 0x15a   :  { %1298 = vmatpush3.bf16.msra.mxu0 %v1295_v36  ;;  %v893_v36 = vld [vmem:[%s1840_s10 + $0x28] sm:$0xff] }
 0x15b   :  { %v384_v22 = vmax.f32 %v382_v19, %v383_v20  ;;  %1311 = vmatprep.subr.bf16.mxu0 %v1490_v35  ;;  %v1318_v37 = vpack.c.bf16 %v893_v36, %v892_v34 }
 0x15d   :  { %v492_v23 = vsel %vm240_vm3, %v384_v22, %v375_v21 }
 0x15e   :  { %1196 = vmatmul.mubr.msk.f32.vlgmr.msra.gmra.mrb[2].mxu1 %vm366_vm4, %v492_v23 }
 0x15f   :  { %1236 = vmatprep.mubr.msk.f32.mxu1 %vm1489_vm0, %v1488_v0  ;;  %1301 = vmatpush3.bf16.msra.mxu1 %v1300_v39  ;;  %v895_v39 = vld [vmem:[%s1840_s10 + $0x38] sm:$0xff] }
 0x160   :  { %1302 = vmatprep.subr.bf16.mxu1 %v1490_v35  ;;  %v1321_v40 = vpack.c.bf16 %v895_v39, %v894_v38 }
 0x163   :  { %1304 = vmatpush3.bf16.msra.mxu1 %v1303_v42  ;;  %v980_v42 = vld [vmem:[#allocation10 + $0x8] sm:$0xff] }
 0x164   :  { %1305 = vmatprep.subr.bf16.mxu1 %v1490_v35  ;;  %v1324_v43 = vpack.c.bf16 %v980_v42, %v979_v41 }
 0x167   :  { %1307 = vmatpush3.bf16.msra.mxu1 %v1306_v45 }
 0x168   :  { %1308 = vmatprep.subr.bf16.mxu1 %v1490_v35 }
 0x16b   :  { %1310 = vmatpush3.bf16.msra.mxu1 %v1309_v48  ;;  %v1100_v48 = vld [vmem:[%s1839_s9] ss:$0 sm:$0xff] }
 0x16c   :  { %1323 = vmatprep.subr.bf16.mxu1 %v1490_v35 }
 0x220   :  { %v1183_v50 = vpop.f32.mrb[4].mxu0 }
 0x221   :  { %v467_v51 = vpop.f32.mrb[5].mxu0 }
 0x224   :  { %v1186_v52 = vpop.f32.mrb[6].mxu0 }
 0x225   :  { %v477_v53 = vpop.f32.mrb[7].mxu0 }
 0x231   :  { %v561_v56 = vpop.f32.mrb[2].mxu1 }
 0x232   :  { %v572_v57 = vsub.f32 %v561_v56, %v1094_v55  ;;  %v1197_v58 = vpop.f32.mrb[3].mxu1 }
 0x234   :  { %v580_v59 = vrot.slane %v572_v57, %v1673_v49 }
 0x236   :  { %v581_v60 = vcombine.high %v580_v59, %v580_v59  ;;  %v588_v61 = vrot.slane %v580_v59, %v1673_v49 }
 0x238   :  { %v595_v62 = vrot.slane %v581_v60, %v1673_v49  ;;  %v599_v63 = vrot.slane %v588_v61, %v1676_v54 }
 0x23a   :  { %v603_v1 = vrot.slane %v595_v62, %v1676_v54  ;;  %v607_v2 = vsub.f32 %v1183_v50, %v599_v63  ;;  %v606_v3 = vsub.f32 %v467_v51, %v599_v63 }
 0x23c   :  { %v611_v4 = vmax.f32 %v607_v2, 0.0  ;;  %v610_v5 = vmax.f32 %v606_v3, 0.0  ;;  %v608_v6 = vsub.f32 %v477_v53, %v603_v1  ;;  %v609_v7 = vsub.f32 %v1186_v52, %v603_v1 }
 0x23e   :  { %v616_v8 = vsel %vm614_vm5, %v611_v4, -inf  ;;  %v615_v9 = vsel %vm614_vm5, %v610_v5, -inf  ;;  %1214 = vmatprep.mubr.msk.f32.mxu0 %vm614_vm5, %v610_v5  ;;  %v612_v10 = vmax.f32 %v608_v6, 0.0  ;;  %v613_v11 = vmax.f32 %v609_v7, 0.0 }
 0x23f   :  { %v617_v12 = vmax.f32 %v615_v9, %v616_v8  ;;  %1215 = vmatmul.mubr.msk.f32.vlgmr.msra.gmra.mrb[8].mxu0 %vm614_vm5, %v611_v4 }
 0x240   :  { %v624_v13 = vsel %vm614_vm5, %v612_v10, -inf  ;;  %1217 = vmatprep.mubr.msk.f32.mxu0 %vm614_vm5, %v612_v10  ;;  %v625_v14 = vsel %vm614_vm5, %v613_v11, -inf  ;;  %1313 = vmatpush3.bf16.msra.mxu0 %v1312_v31 }
 0x241   :  { %v618_v15 = vrot.slane %v617_v12, 4  ;;  %v626_v16 = vmax.f32 %v624_v13, %v625_v14  ;;  %1314 = vmatprep.subr.bf16.mxu0 %v1490_v35 }
 0x243   :  { %v619_v17 = vmax.f32 %v617_v12, %v618_v15  ;;  %v627_v18 = vrot.slane %v626_v16, 4  ;;  %1218 = vmatmul.mubr.msk.f32.gmra.mrb[10].mxu0 %vm614_vm5, %v613_v11 }
 0x244   :  { %1255 = vmatprep.mubr.msk.f32.mxu0 %vm1489_vm0, %v1488_v0 }
 0x245   :  { %v628_v19 = vmax.f32 %v626_v16, %v627_v18  ;;  %v620_v20 = vrot.slane %v619_v17, 2 }
 0x247   :  { %v621_v21 = vmax.f32 %v619_v17, %v620_v20  ;;  %v629_v22 = vrot.slane %v628_v19, 2 }
 0x249   :  { %v622_v23 = vrot.slane %v621_v21, 1  ;;  %v630_v24 = vmax.f32 %v628_v19, %v629_v22  ;;  %v982_v22 = vld [vmem:[#allocation10 + $0x18] sm:$0xff] }
 0x24b   :  { %v631_v25 = vrot.slane %v630_v24, 1  ;;  %v623_v26 = vmax.f32 %v621_v21, %v622_v23  ;;  %v981_v21 = vld [vmem:[#allocation10 + $0x10] sm:$0xff] }
 0x24c   :  { %v1327_v23 = vpack.c.bf16 %v982_v22, %v981_v21 }
 0x24d   :  { %v632_v27 = vmax.f32 %v630_v24, %v631_v25  ;;  %v1101_v24 = vld [vmem:[%s1841_s11] ss:$0 sm:$0xff] }
 0x24f   :  { %v748_v28 = vsel %vm240_vm3, %v632_v27, %v623_v26 }
 0x250   :  { %1237 = vmatmul.mubr.msk.f32.vlgmr.msra.gmra.mrb[4].mxu1 %vm614_vm5, %v748_v28 }
 0x251   :  { %1266 = vmatprep.mubr.msk.f32.mxu1 %vm1489_vm0, %v1488_v0  ;;  %v891_v0 = vld [vmem:[%s1840_s10 + $0x18] sm:$0xff]  ;;  %1325 = vmatpush3.bf16.msra.mxu1 %v1324_v43 }
 0x252   :  { %v1315_v33 = vpack.c.bf16 %v891_v0, %v890_v32  ;;  %1326 = vmatprep.subr.bf16.mxu1 %v1490_v35 }
 0x254   :  { %1316 = vmatpush3.bf16.msra.mxu0 %v1315_v33 }
 0x255   :  { %1317 = vmatprep.subr.bf16.mxu0 %v1490_v35  ;;  %1328 = vmatpush3.bf16.msra.mxu1 %v1327_v23 }
 0x258   :  { %1319 = vmatpush3.bf16.msra.mxu0 %v1318_v37 }
 0x259   :  { %1320 = vmatprep.subr.bf16.mxu0 %v1490_v35 }
 0x25c   :  { %1322 = vmatpush3.bf16.msra.mxu0 %v1321_v40 }
 0x312   :  { %v1216_v44 = vpop.f32.mrb[8].mxu0 }
 0x313   :  { %v719_v45 = vpop.f32.mrb[9].mxu0 }
 0x316   :  { %v1219_v46 = vpop.f32.mrb[10].mxu0 }
 0x317   :  { %v729_v47 = vpop.f32.mrb[11].mxu0 }
 0x323   :  { %v817_v50 = vpop.f32.mrb[4].mxu1 }
 0x324   :  { %v828_v51 = vsub.f32 %v817_v50, %v1100_v48  ;;  %v1238_v52 = vpop.f32.mrb[5].mxu1 }
 0x326   :  { %v836_v53 = vrot.slane %v828_v51, %v1673_v49 }
 0x328   :  { %v837_v55 = vcombine.high %v836_v53, %v836_v53  ;;  %v844_v56 = vrot.slane %v836_v53, %v1673_v49 }
 0x32a   :  { %v851_v57 = vrot.slane %v837_v55, %v1673_v49  ;;  %v855_v35 = vrot.slane %v844_v56, %v1676_v54 }
 0x32c   :  { %v859_v58 = vrot.slane %v851_v57, %v1676_v54  ;;  %v862_v59 = vsub.f32 %v719_v45, %v855_v35  ;;  %v863_v60 = vsub.f32 %v1216_v44, %v855_v35 }
 0x32e   :  { %v864_v61 = vsub.f32 %v729_v47, %v859_v58  ;;  %v865_v62 = vsub.f32 %v1219_v46, %v859_v58  ;;  %v866_v63 = vmax.f32 %v862_v59, 0.0  ;;  %v867_v1 = vmax.f32 %v863_v60, 0.0 }
 0x330   :  { %v868_v2 = vmax.f32 %v864_v61, 0.0  ;;  %v869_v3 = vmax.f32 %v865_v62, 0.0  ;;  %v870_v4 = vsel %vm614_vm5, %v866_v63, -inf  ;;  %v871_v5 = vsel %vm614_vm5, %v867_v1, -inf }
 0x331   :  { %v872_v6 = vmax.f32 %v870_v4, %v871_v5 }
 0x332   :  { %v879_v7 = vsel %vm614_vm5, %v868_v2, -inf  ;;  %v880_v49 = vsel %vm614_vm5, %v869_v3, -inf }
 0x333   :  { %v873_v8 = vrot.slane %v872_v6, 4  ;;  %v881_v9 = vmax.f32 %v879_v7, %v880_v49 }
 0x335   :  { %v874_v54 = vmax.f32 %v872_v6, %v873_v8  ;;  %v882_v10 = vrot.slane %v881_v9, 4 }
 0x337   :  { %v875_v11 = vrot.slane %v874_v54, 2  ;;  %v883_v12 = vmax.f32 %v881_v9, %v882_v10 }
 0x339   :  { %v876_v13 = vmax.f32 %v874_v54, %v875_v11  ;;  %v884_v14 = vrot.slane %v883_v12, 2 }
 0x33b   :  { %v877_v15 = vrot.slane %v876_v13, 1  ;;  %v885_v16 = vmax.f32 %v883_v12, %v884_v14 }
 0x33d   :  { %v886_v17 = vrot.slane %v885_v16, 1  ;;  %v878_v18 = vmax.f32 %v876_v13, %v877_v15 }
 0x33f   :  { %v887_v19 = vmax.f32 %v885_v16, %v886_v17 }
 0x341   :  { %v905_v20 = vsel %vm240_vm3, %v887_v19, %v878_v18 }
 0x342   :  { %1256 = vmatmul.mubr.msk.f32.vlgmr.msra.gmra.mrb[12].mxu0 %vm614_vm5, %v905_v20 }
 0x415   :  { %v974_v25 = vpop.f32.mrb[12].mxu0 }
 0x416   :  { %v975_v26 = vadd.f32 %v1101_v24, %v974_v25  ;;  %v1257_v27 = vpop.f32.mrb[13].mxu0 }
 0x418   :  { %v978_v28 = vmax.f32 %v975_v26, 0.0 }
 0x41a   :  { %1267 = vmatmul.mubr.msk.f32.vlgmr.msra.gmra.mrb[6].mxu1 %vm366_vm4, %v978_v28 }
 0x4ed   :  { %v1059_v30 = vpop.f32.mrb[6].mxu1 }
 0x4ee   :  { %v1060_v31 = vadd.f32 %v1103_v29, %v1059_v30  ;;  %v1268_v32 = vpop.f32.mrb[7].mxu1 }
 0x4f0   :  { %1063 = vst [vmem:[#allocation11] sm:$0x3] %v1060_v31 }
 0x4f1   :  { %1462 = shalt.err (!%p1459_p2)
}
 0x4f2   :  { %s1463_s23 = scalar_lea.hbm %s1844_s14, 32 }
 0x4f3   :  { %p1464_p3 = scmp.ne.s32.totalorder %s1844_s14, %s1463_s23  ;;  %p1467_p4 = scmp.lt.u32.totalorder %s1463_s23, %s1844_s14 }
 0x4f5   :  { %p1469_p5 = pnand %p1467_p4, %p1464_p3 }
 0x4f7   :  { %1472 = shalt.err (!%p1469_p5)
}
 0x4f8   :  { %1073 = dma.vmem_to_hbm [thread:$0]  %s1071_s26, 32, %s1844_s14, [#allocation4]  }
 0x4f9   :  { %1479 = dma.done.wait [#allocation4], 32  }
 0x4fa   :  { %1480 = vsyncadd [#allocation4], 4294967264 }
 0x4fb   :  { %1077 = vsyncpa [#allocation3], 1 }
 0x4fc   :  { %1078 = vsyncpa [#allocation6], 1 }
 0x4fd   :  { %1079 = vsyncpa [#allocation9], 1 }
 0x4fe   :  { %1080 = vsyncpa [#allocation4], 1 }

</bundles_post_ra>
